<compile_context>
chip_gen: v7x
topology: tpu7x:2x2x1
jax: 0.10.0
libtpu: 0.0.40
codegen_flags: <defaults>
</compile_context>

<pallas_src>
import jax
import jax.numpy as jnp
from jax.experimental import pallas as pl
from jax.experimental.pallas import tpu as pltpu


def _initial_block_kernel(pt_ref, w_ref, par_ref, out_ref):
    # pt_ref : (27, TP) f32 im2col patches, rows ordered (kh, kw, ci) row-major
    # w_ref  : (13, 27) f32 conv weight, cols in the same (kh, kw, ci) order
    # par_ref: (16, 3)  f32 packed per-channel [bn_scale, bn_shift, prelu_alpha]
    # out_ref: (16, TP) f32
    pt = pt_ref[...]                                                  # (27, TP)

    # Conv2d(3->13, 3x3, stride 2, pad 1) as one MXU matmul.
    conv = jnp.dot(w_ref[...], pt,
                   preferred_element_type=jnp.float32)                # (13, TP)

    # MaxPool2d(2, stride 2): the 2x2 window pixels are the conv taps with
    # (kh, kw) in {1,2}x{1,2}; with the (kh, kw, ci) row-major stacking those
    # are patch rows 12:15, 15:18, 21:24, 24:27.  (Do not reorder the im2col
    # stacking in the wrapper without updating these indices.)
    pooled = jnp.maximum(
        jnp.maximum(pt_ref[12:15, :], pt_ref[15:18, :]),
        jnp.maximum(pt_ref[21:24, :], pt_ref[24:27, :]))              # (3, TP)

    # Channel "concat" (conv -> channels 0..12, pool -> 13..15), eval-mode
    # BatchNorm (y*scale + shift) and per-channel PReLU, then one aligned
    # lane-dense (16, TP) store.
    y = jnp.concatenate([conv, pooled], axis=0)                       # (16, TP)
    scale = par_ref[:, 0:1]
    shift = par_ref[:, 1:2]
    alpha = par_ref[:, 2:3]
    y = y * scale + shift
    y = jnp.where(y >= 0.0, y, alpha * y)
    out_ref[...] = y


def _round_up(x, m):
    return (x + m - 1) // m * m


def _choose_tile(P, N, tp_max):
    # Large lane tiles (multiple of 256) to amortize per-grid-step overhead;
    # force >= 2 pixel tiles when N == 1 so both v7x TensorCores get work.
    min_tiles = 1 if N >= 2 else 2
    tp = _round_up(-(-P // min_tiles), 256)
    tp = min(tp, tp_max)
    if tp >= P:
        tp = P              # single full-extent lane block (always legal)
    return tp


def initial_block_forward(x_nchw, w_oihw, gamma, beta, run_mean, run_var,
                          prelu_alpha, eps=1e-3, tp_max=32768):
    N, C, H, W = x_nchw.shape
    assert C == 3 and H % 2 == 0 and W % 2 == 0
    Ho, Wo = H // 2, W // 2
    P = Ho * Wo

    x = x_nchw.astype(jnp.float32)                                    # NCHW

    # --- glue (XLA): im2col for the strided conv, transposed so the pixel
    # axis rides the lanes.  Tap rows are stacked (kh, kw, ci) ROW-MAJOR; the
    # in-kernel pool slices (12:15, 15:18, 21:24, 24:27) depend on this order.
    xp = jnp.pad(x, ((0, 0), (0, 0), (1, 1), (1, 1)))                 # (N,3,H+2,W+2)
    taps = [xp[:, :, kh:kh + 2 * Ho:2, kw:kw + 2 * Wo:2]              # (N,3,Ho,Wo)
            for kh in range(3) for kw in range(3)]
    patches = jnp.stack(taps, axis=1).reshape(N, 27, P)               # rows=(kh,kw,ci)

    # --- packed per-channel parameters: [bn_scale, bn_shift, prelu_alpha] ---
    inv_std = 1.0 / jnp.sqrt(run_var.astype(jnp.float32) + eps)
    scale = gamma.astype(jnp.float32) * inv_std                       # (16,)
    shift = beta.astype(jnp.float32) - run_mean.astype(jnp.float32) * scale
    params = jnp.stack(
        [scale, shift, prelu_alpha.astype(jnp.float32)], axis=1)      # (16, 3)

    # torch OIHW (13,3,3,3) -> (O, kh, kw, ci) -> (13, 27), matching patch rows.
    wmat = jnp.transpose(w_oihw.astype(jnp.float32), (0, 2, 3, 1)).reshape(13, 27)

    TP = _choose_tile(P, N, tp_max)
    n_tiles = pl.cdiv(P, TP)
    grid = (N, n_tiles)

    cost = pl.CostEstimate(
        flops=2 * 13 * 27 * P * N,
        transcendentals=0,
        bytes_accessed=4 * ((27 + 16) * P * N + 13 * 27 + 16 * 3))

    out = pl.pallas_call(
        _initial_block_kernel,
        out_shape=jax.ShapeDtypeStruct((N, 16, P), jnp.float32),
        grid_spec=pltpu.PrefetchScalarGridSpec(
            num_scalar_prefetch=0,
            grid=grid,
            in_specs=[
                pl.BlockSpec((None, 27, TP), lambda n, p: (n, 0, p)),  # patches
                pl.BlockSpec((13, 27), lambda n, p: (0, 0)),           # conv weight
                pl.BlockSpec((16, 3), lambda n, p: (0, 0)),            # packed params
            ],
            out_specs=pl.BlockSpec((None, 16, TP), lambda n, p: (n, 0, p)),
        ),
        compiler_params=pltpu.CompilerParams(
            dimension_semantics=("parallel", "parallel"),
            vmem_limit_bytes=48 * 1024 * 1024),
        cost_estimate=cost,
    )(patches, wmat, params)

    # Free (contiguous) reshape back to NCHW; no slicing / padding copies.
    return out.reshape(N, 16, Ho, Wo)


def _reference(x_nchw, w_oihw, gamma, beta, run_mean, run_var, prelu_alpha,
               eps=1e-3):
    x = jnp.transpose(x_nchw, (0, 2, 3, 1)).astype(jnp.float32)       # NHWC
    w_hwio = jnp.transpose(w_oihw, (2, 3, 1, 0)).astype(jnp.float32)
    conv = jax.lax.conv_general_dilated(
        x, w_hwio, window_strides=(2, 2), padding=((1, 1), (1, 1)),
        dimension_numbers=("NHWC", "HWIO", "NHWC"))
    pooled = jax.lax.reduce_window(
        x, -jnp.inf, jax.lax.max, (1, 2, 2, 1), (1, 2, 2, 1), "VALID")
    cat = jnp.concatenate([conv, pooled], axis=-1)
    inv_std = 1.0 / jnp.sqrt(run_var + eps)
    y = (cat - run_mean) * inv_std * gamma + beta
    y = jnp.where(y >= 0.0, y, prelu_alpha * y)
    return jnp.transpose(y, (0, 3, 1, 2))                             # NCHW


if __name__ == "__main__":
    key = jax.random.PRNGKey(0)
    kx, kw, kg, kb, km, kv, kx2 = jax.random.split(key, 7)

    # Conv2d(3, 13, 3x3, stride=2, padding=1, bias=False) weight, torch OIHW.
    w = jax.random.normal(kw, (13, 3, 3, 3), dtype=jnp.float32) * 0.1
    # BatchNorm2d(16, eps=1e-3) parameters / running stats.
    gamma = 1.0 + 0.1 * jax.random.normal(kg, (16,), dtype=jnp.float32)
    beta = 0.1 * jax.random.normal(kb, (16,), dtype=jnp.float32)
    run_mean = 0.1 * jax.random.normal(km, (16,), dtype=jnp.float32)
    run_var = 1.0 + 0.1 * jax.random.uniform(kv, (16,), dtype=jnp.float32)
    # PReLU(num_parameters=16): PyTorch default init = 0.25.
    prelu_alpha = jnp.full((16,), 0.25, dtype=jnp.float32)

    # Case 1: batch of 2, 16x16 image (single exact lane tile per image).
    x1 = jax.random.normal(kx, (2, 3, 16, 16), dtype=jnp.float32)
    # Case 2: batch of 1, 32x36 image (forces >=2 lane tiles for the v7x
    # megacore path and exercises the ragged, Pallas-masked last tile).
    x2 = jax.random.normal(kx2, (1, 3, 32, 36), dtype=jnp.float32)

    for x in (x1, x2):
        out = jax.block_until_ready(
            initial_block_forward(x, w, gamma, beta, run_mean, run_var,
                                  prelu_alpha))
        ref = _reference(x, w, gamma, beta, run_mean, run_var, prelu_alpha)
        N, _, H, W = x.shape
        assert out.shape == (N, 16, H // 2, W // 2), out.shape
        assert jnp.allclose(out, ref, atol=1e-4, rtol=1e-4), (
            float(jnp.max(jnp.abs(out - ref))))

    print("KERNEL_OK")
</pallas_src>

<mosaic_0001>
module attributes {stable_mosaic.version = 11 : i64} {
  func.func @_initial_block_kernel(%arg0: i32, %arg1: i32, %arg2: memref<1x27x64xf32, #tpu.memory_space<vmem>>, %arg3: memref<13x27xf32, #tpu.memory_space<vmem>>, %arg4: memref<16x3xf32, #tpu.memory_space<vmem>>, %arg5: memref<1x16x64xf32, #tpu.memory_space<vmem>>) attributes {dimension_semantics = [#tpu.dimension_semantics<parallel>, #tpu.dimension_semantics<parallel>], iteration_bounds = array<i64: 2, 1>, scalar_prefetch = 0 : i64, scratch_operands = 0 : i64, tpu.core_type = #tpu.core_type<tc>, window_params = [{transform_indices = @transform_0, window_bounds = array<i64: 1, 27, 64>}, {pipeline_mode = #tpu.pipeline_mode<synchronous>, transform_indices = @transform_1, window_bounds = array<i64: 13, 27>}, {pipeline_mode = #tpu.pipeline_mode<synchronous>, transform_indices = @transform_2, window_bounds = array<i64: 16, 3>}, {transform_indices = @transform_3, window_bounds = array<i64: 1, 16, 64>}]} {
    %c0 = arith.constant 0 : index
    %c0_0 = arith.constant 0 : index
    %c0_1 = arith.constant 0 : index
    %0 = vector.load %arg2[%c0, %c0_0, %c0_1] : memref<1x27x64xf32, #tpu.memory_space<vmem>>, vector<1x27x64xf32>
    %1 = vector.shape_cast %0 : vector<1x27x64xf32> to vector<27x64xf32>
    %c0_2 = arith.constant 0 : index
    %c0_3 = arith.constant 0 : index
    %2 = vector.load %arg3[%c0_2, %c0_3] : memref<13x27xf32, #tpu.memory_space<vmem>>, vector<13x27xf32>
    %cst = arith.constant dense<0.000000e+00> : vector<13x64xf32>
    %3 = tpu.matmul %2, %1, %cst {dimension_numbers = #tpu.dot_dimension_numbers<[1], [0], [0], [1], [0, 0, 1, 1], [], []>} : vector<13x27xf32>, vector<27x64xf32>, vector<13x64xf32> -> vector<13x64xf32>
    %c0_4 = arith.constant 0 : index
    %c12 = arith.constant 12 : index
    %c0_5 = arith.constant 0 : index
    %4 = vector.load %arg2[%c0_4, %c12, %c0_5] : memref<1x27x64xf32, #tpu.memory_space<vmem>>, vector<1x3x64xf32>
    %5 = vector.shape_cast %4 : vector<1x3x64xf32> to vector<3x64xf32>
    %c0_6 = arith.constant 0 : index
    %c15 = arith.constant 15 : index
    %c0_7 = arith.constant 0 : index
    %6 = vector.load %arg2[%c0_6, %c15, %c0_7] : memref<1x27x64xf32, #tpu.memory_space<vmem>>, vector<1x3x64xf32>
    %7 = vector.shape_cast %6 : vector<1x3x64xf32> to vector<3x64xf32>
    %8 = arith.maximumf %5, %7 : vector<3x64xf32>
    %c0_8 = arith.constant 0 : index
    %c21 = arith.constant 21 : index
    %c0_9 = arith.constant 0 : index
    %9 = vector.load %arg2[%c0_8, %c21, %c0_9] : memref<1x27x64xf32, #tpu.memory_space<vmem>>, vector<1x3x64xf32>
    %10 = vector.shape_cast %9 : vector<1x3x64xf32> to vector<3x64xf32>
    %c0_10 = arith.constant 0 : index
    %c24 = arith.constant 24 : index
    %c0_11 = arith.constant 0 : index
    %11 = vector.load %arg2[%c0_10, %c24, %c0_11] : memref<1x27x64xf32, #tpu.memory_space<vmem>>, vector<1x3x64xf32>
    %12 = vector.shape_cast %11 : vector<1x3x64xf32> to vector<3x64xf32>
    %13 = arith.maximumf %10, %12 : vector<3x64xf32>
    %14 = arith.maximumf %8, %13 : vector<3x64xf32>
    %15 = tpu.concatenate %3, %14 in 0 : vector<13x64xf32>, vector<3x64xf32> -> vector<16x64xf32>
    %c0_12 = arith.constant 0 : index
    %c0_13 = arith.constant 0 : index
    %16 = vector.load %arg4[%c0_12, %c0_13] : memref<16x3xf32, #tpu.memory_space<vmem>>, vector<16x1xf32>
    %c0_14 = arith.constant 0 : index
    %c1 = arith.constant 1 : index
    %17 = vector.load %arg4[%c0_14, %c1] : memref<16x3xf32, #tpu.memory_space<vmem>>, vector<16x1xf32>
    %c0_15 = arith.constant 0 : index
    %c2 = arith.constant 2 : index
    %18 = vector.load %arg4[%c0_15, %c2] : memref<16x3xf32, #tpu.memory_space<vmem>>, vector<16x1xf32>
    %19 = vector.broadcast %16 : vector<16x1xf32> to vector<16x64xf32>
    %20 = arith.mulf %15, %19 : vector<16x64xf32>
    %21 = vector.broadcast %17 : vector<16x1xf32> to vector<16x64xf32>
    %22 = arith.addf %20, %21 : vector<16x64xf32>
    %cst_16 = arith.constant 0.000000e+00 : f32
    %23 = vector.broadcast %cst_16 : f32 to vector<16x64xf32>
    %24 = arith.cmpf oge, %22, %23 : vector<16x64xf32>
    %25 = vector.broadcast %18 : vector<16x1xf32> to vector<16x64xf32>
    %26 = arith.mulf %25, %22 : vector<16x64xf32>
    %27 = arith.select %24, %22, %26 : vector<16x64xi1>, vector<16x64xf32>
    %c0_17 = arith.constant 0 : index
    %c0_18 = arith.constant 0 : index
    %c0_19 = arith.constant 0 : index
    %28 = vector.load %arg5[%c0_17, %c0_18, %c0_19] : memref<1x16x64xf32, #tpu.memory_space<vmem>>, vector<1x16x64xf32>
    %29 = vector.shape_cast %28 : vector<1x16x64xf32> to vector<16x64xf32>
    %30 = vector.shape_cast %27 : vector<16x64xf32> to vector<1x16x64xf32>
    tpu.vector_store %arg5[%c0_17, %c0_18, %c0_19], %30 {strides = array<i32>} : memref<1x16x64xf32, #tpu.memory_space<vmem>>, vector<1x16x64xf32>,
    return
  }
  func.func @transform_0(%arg0: i32, %arg1: i32) -> (i32, i32, i32) {
    %c0_i32 = arith.constant 0 : i32
    %c0_i32_0 = arith.constant 0 : i32
    return %arg0, %c0_i32, %arg1 : i32, i32, i32
  }
  func.func @transform_1(%arg0: i32, %arg1: i32) -> (i32, i32) {
    %c0_i32 = arith.constant 0 : i32
    %c0_i32_0 = arith.constant 0 : i32
    %c0_i32_1 = arith.constant 0 : i32
    return %c0_i32, %c0_i32_0 : i32, i32
  }
  func.func @transform_2(%arg0: i32, %arg1: i32) -> (i32, i32) {
    %c0_i32 = arith.constant 0 : i32
    %c0_i32_0 = arith.constant 0 : i32
    %c0_i32_1 = arith.constant 0 : i32
    return %c0_i32, %c0_i32_0 : i32, i32
  }
  func.func @transform_3(%arg0: i32, %arg1: i32) -> (i32, i32, i32) {
    %c0_i32 = arith.constant 0 : i32
    %c0_i32_0 = arith.constant 0 : i32
    return %arg0, %c0_i32, %arg1 : i32, i32, i32
  }
}

</mosaic_0001>

<bundles_post_ra>
// kernel: tpu_custom_call.1
= control target key start
LH: loop header
LB: loop body
LE: loop exit
PB: predicated region body
PF: predicated region fallthrough
CT: control target
= control target key end

     0   :  { %8 = vsyncpa [#allocation3], 0  ;;  %s777_s0 = inlined_call_operand.vmem [shape: f32[2,27,64], index: 0, kind: input, shape index: {}]   ;;  %s778_s1 = inlined_call_operand.vmem [shape: f32[13,27], index: 1, kind: input, shape index: {}]   ;;  %s779_s2 = inlined_call_operand.vmem [shape: f32[16,3], index: 2, kind: input, shape index: {}]   ;;  %s780_s3 = inlined_call_operand.hbm [shape: f32[2,16,64], index: 3, kind: output, shape index: {}]  }
   0x1   :  { %10 = vsyncpa [#allocation3 + $0x1], 0  ;;  %s648_s12 = smov 0   ;;  %s650_s13 = smov 0  }
   0x2   :  { %s652_s14 = smov 0   ;;  %s654_s15 = smov 0  }
   0x3   :  { %s656_s16 = smov 0   ;;  %s658_s17 = smov 0  }
   0x4 LB: > { %s431_s18 = sadd.s32 4294967295, %s619_s17   ;;  %s432_s19 = sadd.s32 4294967294, %s619_s17   ;;  %s619_s17 = sphi %s658_s17, %s16_s17   ;;  %s615_s16 = sphi %s656_s16, %s787_s16   ;;  %s611_s15 = sphi %s654_s15, %s786_s15   ;;  %s607_s14 = sphi %s652_s14, %s785_s14   ;;  %s603_s13 = sphi %s650_s13, %s784_s13   ;;  %s599_s12 = sphi %s648_s12, %s783_s12  }
   0x5   : > { %s28_s20 = sadd.s32 1, %s615_s16  ;;  %s107_s21 = sadd.s32 1, %s607_s14 }
   0x6   : > { %p30_p0 = scmp.ge.s32.totalorder %s28_s20, 2  ;;  %p117_p1 = scmp.ne.s32.totalorder %s607_s14, %s603_s13 }
   0x7   : > { %p118_p2 = scmp.eq.s32.totalorder %s431_s18, 1  ;;  %p123_p3 = scmp.ne.s32.totalorder %s603_s13, %s599_s12 }
   0x8   : > { %s789_s20 = smov (%p30_p0, %s28_s20), 0  ;;  %p124_p5 = scmp.eq.s32.totalorder %s432_s19, 1 }
   0x9   : > { %p688_p4 = por %p118_p2, %p117_p1  ;;  %s102_s23 = ssub.s32 %s615_s16, %s789_s20 }
   0xa   : > { %p435_p6 = scmp.ge.s32.totalorder %s619_s17, 1  ;;  %p105_p7 = scmp.eq.s32.totalorder %s102_s23, 0 }
   0xb   : > { %p695_p8 = por %p124_p5, %p123_p3  ;;  %p159_p9 = scmp.lt.s32.totalorder %s619_s17, 3 }
   0xc   : > { %s701_s25 = scalar_select %p105_p7, %s607_s14, %s107_s21  }
   0xd   : > { %p160_p10 = pnand %p435_p6, %p159_p9 }
   0xe   : > { %p186_p11 = scmp.lt.s32.totalorder (!%p160_p10), %s611_s15, 1  ;;  %v198_v0 = vld [vmem:[%s778_s1] sm:$0xff] (!%p160_p10)  ;;  %vm200_vm0 = vcmask (!%p160_p10), 220160   ;;  %v621_v1 = vmov (!%p160_p10), 1   ;;  %v622_v3 = vmov (!%p160_p10), 0   ;;  %v298_v4 = vld [vmem:[%s779_s2 + $0x8] sm:$0xff] (!%p160_p10) }
   0xf   : > { %163 = sbr.rel (%p160_p10) target bundleno = 272 (0x110), region = 32  ;;  %463 = vmatprep.mubr.msk.f32.mxu0 (!%p160_p10), %vm200_vm0, %v198_v0  ;;  %538 = vset.pattern.permute.xlu1 (!%p160_p10), %v621_v1  ;;  %v297_v2 = vld [vmem:[%s779_s2] sm:$0xff] (!%p160_p10)  ;;  %vm207_vm1 = vcmask (!%p160_p10), 1042432   ;;  %vm623_vm2 = vmmov (!%p160_p10), 1   ;;  %v624_v11 = vmov (!%p160_p10), 2   ;;  %s183_s18 = sand.u32 (!%p160_p10), 1, %s603_s13  }
  0x10   : > { %537 = vset.pattern.permute.xlu0 (!%p160_p10), %v622_v3  ;;  %312 = vperm.xlu1 (!%p160_p10), %538, %v297_v2   ;;  %vm471_vm3 = vmpackc.low (!%p160_p10), %vm207_vm1, %vm623_vm2  ;;  %v199_v12 = vld [vmem:[%s778_s1 + $0x8] sm:$0x1f] (!%p160_p10)  ;;  %s436_s19 = sshll.u32 (!%p160_p10), %s183_s18, 4  ;;  %vm295_vm4 = vcmask (!%p160_p10), 1044480   ;;  %s448_s26 = sshll.u32 (!%p160_p10), %s611_s15, 8  ;;  %vm335_vm5 = vcmask (!%p160_p10), 523264  }
  0x11   : > { %301 = vperm.xlu0 (!%p160_p10), %537, %v297_v2   ;;  %s185_s21 = scalar_lea.vmem (!%p160_p10), [#allocation2], %s436_s19  ;;  %s727_s29 = scalar_lea.hbm (!%p160_p10), %s780_s3, %s448_s26 }
  0x12   : > { %s353_s23 = sshll.u32 (!%p160_p10), %s185_s21, 4  ;;  %s625_s4 = smov (!%p160_p10), [#allocation2]   ;;  %s729_s23 = int_to_ptr.vmem [resolvable:$true] %s353_s23 }
  0x13   : > { %s545_s5 = sshll.u32 (!%p160_p10), %s625_s4, 4  ;;  %s546_s5 = int_to_ptr.vmem [resolvable:$false] %s545_s5 }
  0x14   : > { %316 = vperm.xlu1 (!%p160_p10), %538, %v298_v4   ;;  %p548_p1 = scmp.lt.s32.totalorder (!%p160_p10), %s729_s23, %s546_s5 }
  0x15   : > { %306 = vperm.xlu0 (!%p160_p10), %537, %v298_v4  }
  0x16   : > { %s187_s30 = scalar_select %p186_p11, %s611_s15, 1 }
  0x17   : > { %s731_s15 = scalar_lea.sflag [#allocation3], %s183_s18 }
  0x18   : > { %s447_s6 = sshll.u32 %s187_s30, 5  ;;  %540 = vset.pattern.permute.xlu1 %v624_v11  ;;  %s541_s30 = scalar_lea.vmem %s729_s23, 256 }
  0x19   : > { %s193_s9 = scalar_lea.vmem %s777_s0, %s447_s6  ;;  %539 = vset.pattern.permute.xlu0 %v624_v11  ;;  %328 = vperm.xlu1 %540, %v298_v4   ;;  %p542_p12 = scmp.ne.s32.totalorder %s729_s23, %s541_s30 }
  0x1a   : > { %v194_v5 = vld [vmem:[%s193_s9] sm:$0xff]  ;;  %v195_v6 = vld [vmem:[%s193_s9 + $0x8] sm:$0xff]  ;;  %v196_v7 = vld [vmem:[%s193_s9 + $0x10] sm:$0xff]  ;;  %324 = vperm.xlu0 %539, %v297_v2   ;;  %s547_s6 = scalar_lea.vmem %s546_s5, 512 }
  0x1b   : > { %v466_v8 = vpack.c.bf16 %v195_v6, %v194_v5  ;;  %v197_v9 = vld [vmem:[%s193_s9 + $0x18] sm:$0x7]  ;;  %v286_v13 = vld [vmem:[%s193_s9 + $0xc] sm:$0x7]  ;;  %v287_v14 = vld [vmem:[%s193_s9 + $0xf] sm:$0x7]  ;;  %p543_p13 = pnand %p542_p12, %p688_p4  ;;  %p549_p2 = scmp.lt.s32.totalorder %s547_s6, %s541_s30 }
  0x1c   : > { %v470_v10 = vpack.c.bf16 %v197_v9, %v196_v7  ;;  %v289_v15 = vld [vmem:[%s193_s9 + $0x15] sm:$0x7]  ;;  %v288_v16 = vmax.f32 %v286_v13, %v287_v14 }
  0x1d   : > { %467 = vmatprep.subr.bf16.mxu0 %v466_v8  ;;  %v290_v17 = vmax.f32 %v289_v15, %v197_v9  ;;  %p544_p0 = pneg %p543_p13  ;;  %p550_p3 = por %p549_p2, %p548_p1 }
  0x1e   : > { %469 = vmatpush3.bf16.msra.mxu0 %v466_v8 }
  0x1f   : > { %472 = vmatprep.subr.msk.bf16.mxu0 %vm471_vm3, %v470_v10  ;;  %v291_v20 = vmax.f32 %v288_v16, %v290_v17  ;;  %p551_p5 = pnand %p550_p3, %p544_p0 }
  0x21   : > { %v293_v21 = vrot.slane %v291_v20, 3 }
  0x22   : > { %475 = vmatpush3.bf16.msk.msra.mxu0 %vm471_vm3, %v470_v10 }
  0x25   : > { %464 = vmatmul.mubr.msk.f32.vlgmr.msra.gmra.mrb[0].mxu0 %vm200_vm0, %v199_v12 }
  0x8f   : > { %v313_v18 = vpop.permute.xlu1 %312 }
  0x90   : > { %v302_v19 = vpop.permute.xlu0 %301 }
  0x93   : > { %v317_v22 = vpop.permute.xlu1 %316 }
  0x94   : > { %v307_v23 = vpop.permute.xlu0 %306 }
  0x98   : > { %v329_v29 = vpop.permute.xlu1 %328 }
  0x99   : > { %v325_v30 = vpop.permute.xlu0 %324 }
  0xf8   : > { %v465_v24 = vpop.f32.mrb[0].mxu0 }
  0xf9   : > { %v296_v25 = vsel %vm295_vm4, %v465_v24, %v293_v21  ;;  %v277_v26 = vpop.f32.mrb[1].mxu0 }
  0xfa   : > { %v310_v27 = vmul.f32 %v307_v23, %v296_v25  ;;  %v309_v28 = vmul.f32 %v302_v19, %v277_v26 }
  0xfc   : > { %v320_v31 = vadd.f32 %v317_v22, %v310_v27  ;;  %v319_v32 = vadd.f32 %v313_v18, %v309_v28 }
  0xfe   : > { %vm321_vm6 = vcmp.ge.f32.partialorder %v319_v32, 0.0  ;;  %vm322_vm7 = vcmp.ge.f32.partialorder %v320_v31, 0.0  ;;  %v332_v33 = vmul.f32 %v329_v29, %v320_v31  ;;  %v331_v34 = vmul.f32 %v325_v30, %v319_v32 }
 0x100   : > { %v334_v35 = vsel %vm322_vm7, %v320_v31, %v332_v33  ;;  %v333_v36 = vsel %vm321_vm6, %v319_v32, %v331_v34 }
 0x101   : > { %337 = vst.msk [vmem:[%s185_s21 + $0x8] sm:$0xff] %vm335_vm5, %v334_v35  ;;  %336 = vst.msk [vmem:[%s185_s21] sm:$0xff] %vm335_vm5, %v333_v36 }
 0x102   : > { %554 = shalt.err (!%p551_p5)
}
 0x103   : > { %s555_s7 = scalar_lea.hbm %s727_s29, 256  ;;  %s559_s10 = scalar_lea.hbm %s780_s3, 512 }
 0x104   : > { %p556_p6 = scmp.ne.s32.totalorder %s727_s29, %s555_s7  ;;  %p560_p10 = scmp.lt.u32.totalorder %s727_s29, %s780_s3 }
 0x105   : > { %p561_p11 = scmp.lt.u32.totalorder %s559_s10, %s555_s7  ;;  %p563_p13 = scmp.lt.u32.totalorder %s555_s7, %s727_s29 }
 0x106   : > { %p557_p7 = pnand %p556_p6, %p688_p4 }
 0x107   : > { %p562_p12 = por %p561_p11, %p560_p10 }
 0x108   : > { %p558_p9 = pneg %p557_p7 }
 0x109   : > { %p564_p0 = por %p563_p13, %p562_p12 }
 0x10b   : > { %p565_p1 = pnand %p564_p0, %p558_p9 }
 0x10d   : > { %568 = shalt.err (!%p565_p1)
}
 0x10e   : > { %s626_s19 = smov 128   ;;  %s627_s21 = smov 8  }
 0x10f   : > { %476 = dma.vmem_to_hbm [thread:$0]  (%p688_p4), %s729_s23, 256, %s727_s29, %s731_s15, %s626_s19, %s626_s19, %s627_s21  }
 0x110 PF: > { %p482_p2 = scmp.ge.s32.totalorder %s619_s17, 2  ;;  %s368_s26 = sand.u32 1, %s599_s12  }
 0x111   : > { %s369_s27 = scalar_lea.sflag [#allocation3], %s368_s26 }
 0x112   : > { %p479_p3 = pnand %p482_p2, %p695_p8 }
 0x114   : > { %594 = dma.done.wait (!%p479_p3), %s369_s27, 256  }
 0x115   : > { %596 = vsyncadd (!%p479_p3), %s369_s27, 4294967040  ;;  %s16_s17 = sadd.s32 1, %s619_s17   ;;  %s783_s12 = smov %s603_s13 }
 0x116   : > { %p13_p5 = scmp.ge.s32.totalorder %s16_s17, 4   ;;  %s784_s13 = smov %s607_s14 }
 0x117   : > { %s785_s14 = smov %s701_s25  ;;  %s786_s15 = smov %s615_s16 }
 0x118   : > { %s787_s16 = smov %s789_s20  ;;  %15 = sbr.rel (!%p13_p5) target bundleno = 4 (0x4), region = 67 }
 0x11f   :  { %374 = vsyncpa [#allocation3], 1 }
 0x120   :  { %376 = vsyncpa [#allocation3 + $0x1], 1 }

</bundles_post_ra>
